<compile_context>
chip_gen: v6e
topology: v6e:2x2x1
jax: 0.10.0
libtpu: 0.0.40
codegen_flags: <defaults>
</compile_context>

<pallas_src>
import math
import jax
import jax.numpy as jnp
from jax.experimental import pallas as pl
from jax.experimental.pallas import tpu as pltpu  # noqa: F401  (TPU backend)

NEG_BIG = -1.0e9


# --------------------------- Pallas kernel ----------------------------------
def _fused_attention_kernel(obj_ref, frm_ref, mask_ref, hid_ref,
                            wv_r_ref, wv_f_ref, wh_rf_ref, bvh_rf_ref,
                            wa_r_ref, wa_f_ref, out_ref):
    """Single invocation: both attention heads, whole batch, one dense store."""
    B, No, F = obj_ref.shape
    _, Nf, F2 = frm_ref.shape
    A = wa_r_ref.shape[-1]

    # Both hidden-state projections fused into ONE MXU matmul: [B,H] @ [H,2A].
    # (bv + bh) pre-folded into bvh_rf; wa bias dropped (softmax shift-inv).
    h = jnp.dot(hid_ref[...].astype(jnp.bfloat16), wh_rf_ref[...],
                preferred_element_type=jnp.float32) + bvh_rf_ref[...]        # [B, 2A]
    h_r = h[:, :A]                                                           # [B, A]
    h_f = h[:, A:]                                                           # [B, A]

    def head(feats, h_bd, wv_t_ref, wa_row_ref, mask):
        # feats [B, N, D] f32, h_bd [B, A] f32, wv_t [D, A] bf16, wa_row [1, A] f32
        Bn, N, D = feats.shape
        # ONE batched feature projection on the MXU: [B*N, D] @ [D, A].
        v = jnp.dot(feats.reshape(Bn * N, D).astype(jnp.bfloat16),
                    wv_t_ref[...],
                    preferred_element_type=jnp.float32).reshape(Bn, N, A)    # [B, N, A]
        t = jnp.tanh(v + h_bd[:, None, :])                                   # [B, N, A]
        # Score: VPU multiply + lane reduce (keeps tiny [.,A]@[A,1] off the MXU).
        s = jnp.sum(t * wa_row_ref[...].reshape(1, 1, A), axis=-1)           # [B, N]
        if mask is not None:                                                 # static skip
            s = jnp.where(mask < 0.5, NEG_BIG, s)
        s = s - jnp.max(s, axis=-1, keepdims=True)
        e = jnp.exp(s)
        alpha = e * pl.reciprocal(jnp.sum(e, axis=-1, keepdims=True),
                                  approx=True)                               # [B, N]
        # Alpha-weighted sum: VPU multiply + sublane reduce over N.
        return jnp.sum(alpha[:, :, None] * feats, axis=1)                    # [B, D]

    att_o = head(obj_ref[...], h_r, wv_r_ref, wa_r_ref, mask_ref[...])       # [B, F]
    att_f = head(frm_ref[...], h_f, wv_f_ref, wa_f_ref, None)                # [B, 2F]

    # Assemble the output ONCE (region | frame | lane pad) -> one dense store.
    pad = out_ref.shape[1] - (F + F2)
    parts = [att_o, att_f]
    if pad > 0:
        parts.append(jnp.zeros((B, pad), jnp.float32))
    out_ref[...] = jnp.concatenate(parts, axis=-1).astype(out_ref.dtype)


# --------------------------- wrappers ----------------------------------------
def prepare_attention_params(region_params, frame_params):
    """One-time parameter preprocessing (HOISTED out of the per-step path):
    transposes, bias folding, wh/bias fusion, bf16 casts for MXU operands."""
    wv_r, bv_r, wh_r, bh_r, wa_r, _ba_r = region_params   # ba_* unused (shift-inv)
    wv_f, bv_f, wh_f, bh_f, wa_f, _ba_f = frame_params
    A = wv_r.shape[0]
    wv_r_t = jnp.transpose(wv_r).astype(jnp.bfloat16)                    # [F,  A]
    wv_f_t = jnp.transpose(wv_f).astype(jnp.bfloat16)                    # [2F, A]
    wh_rf_t = jnp.concatenate([jnp.transpose(wh_r), jnp.transpose(wh_f)],
                              axis=1).astype(jnp.bfloat16)               # [H, 2A]
    bvh_rf = jnp.concatenate([bv_r + bh_r, bv_f + bh_f]
                             ).reshape(1, 2 * A).astype(jnp.float32)     # [1, 2A]
    wa_r_row = wa_r.reshape(1, A).astype(jnp.float32)                    # [1, A]
    wa_f_row = wa_f.reshape(1, A).astype(jnp.float32)                    # [1, A]
    return (wv_r_t, wv_f_t, wh_rf_t, bvh_rf, wa_r_row, wa_f_row)


def attention_forward(frame_feats, object_feats, object_masks, hidden_state,
                      prepared_params):
    """Fused region+frame SoftAttention; params already preprocessed."""
    wv_r_t, wv_f_t, wh_rf_t, bvh_rf, wa_r_row, wa_f_row = prepared_params
    B, No, F = object_feats.shape
    _, Nf, F2 = frame_feats.shape
    H = hidden_state.shape[-1]
    A = wa_r_row.shape[-1]

    out_dim = F + F2                               # 3F
    out_pad = ((out_dim + 127) // 128) * 128       # lane-dense output width

    flops = int(2 * B * H * 2 * A
                + 2 * B * No * F * A + 2 * B * No * A + 2 * B * No * F
                + 2 * B * Nf * F2 * A + 2 * B * Nf * A + 2 * B * Nf * F2)
    transcendentals = int(B * (No + Nf) * (A + 1))
    bytes_accessed = int(4 * (object_feats.size + frame_feats.size
                              + object_masks.size + hidden_state.size
                              + bvh_rf.size + wa_r_row.size + wa_f_row.size
                              + B * out_pad)
                         + 2 * (wv_r_t.size + wv_f_t.size + wh_rf_t.size))

    out = pl.pallas_call(
        _fused_attention_kernel,
        out_shape=jax.ShapeDtypeStruct((B, out_pad), jnp.float32),
        cost_estimate=pl.CostEstimate(flops=flops,
                                      transcendentals=transcendentals,
                                      bytes_accessed=bytes_accessed),
    )(object_feats, frame_feats, object_masks.astype(jnp.float32), hidden_state,
      wv_r_t, wv_f_t, wh_rf_t, bvh_rf, wa_r_row, wa_f_row)

    return out[:, :out_dim]


attention_forward = jax.jit(attention_forward)


# ---------------- pure-JAX reference (for correctness check) ----------------
def soft_attention_ref(feats, key, mask, wv, bv, wh, bh, wa, ba):
    v = feats @ wv.T + bv
    h = key @ wh.T + bh
    alpha = (jnp.tanh(v + h[:, None, :]) @ wa.T + ba)[..., 0]
    if mask is not None:
        alpha = jnp.where(mask == 0, NEG_BIG, alpha)
    alpha = jax.nn.softmax(alpha, axis=-1)
    return jnp.einsum('bn,bnf->bf', alpha, feats)


def attention_ref(frame_feats, object_feats, object_masks, hidden_state,
                  region_params, frame_params):
    obj_att = soft_attention_ref(object_feats, hidden_state, object_masks,
                                 *region_params)
    mot_att = soft_attention_ref(frame_feats, hidden_state, None,
                                 *frame_params)
    return jnp.concatenate([obj_att, mot_att], axis=-1)


# ---------------- parameter init (PyTorch nn.Linear style, deterministic) ---
def init_linear(key, out_dim, in_dim):
    k1, k2 = jax.random.split(key)
    bound = 1.0 / math.sqrt(in_dim)
    w = jax.random.uniform(k1, (out_dim, in_dim), jnp.float32, -bound, bound)
    b = jax.random.uniform(k2, (out_dim,), jnp.float32, -bound, bound)
    return w, b


def init_soft_attention(key, feat_size, hidden_size, att_size):
    kh, kv, ka = jax.random.split(key, 3)
    wh, bh = init_linear(kh, att_size, hidden_size)
    wv, bv = init_linear(kv, att_size, feat_size)
    wa, ba = init_linear(ka, 1, att_size)
    # order matches the *_params signature: wv, bv, wh, bh, wa, ba
    return (wv, bv, wh, bh, wa, ba)


if __name__ == "__main__":
    B = 2
    feat_projected_size = 32       # F
    hidden_size = 32               # H
    att_size = 32                  # A
    n_obj = 8
    n_frame = 8

    root = jax.random.PRNGKey(0)
    k_region, k_frame, k_ff, k_of, k_mask, k_hid = jax.random.split(root, 6)

    region_params = init_soft_attention(k_region, feat_projected_size,
                                        hidden_size, att_size)
    frame_params = init_soft_attention(k_frame, feat_projected_size * 2,
                                       hidden_size, att_size)

    # One-time preprocessing (would be done at model-load time, not per step).
    prepared = prepare_attention_params(region_params, frame_params)
    prepared = jax.tree_util.tree_map(jax.block_until_ready, prepared)

    frame_feats = jax.random.normal(k_ff, (B, n_frame, feat_projected_size * 2),
                                    jnp.float32)
    object_feats = jax.random.normal(k_of, (B, n_obj, feat_projected_size),
                                     jnp.float32)
    object_masks = (jax.random.uniform(k_mask, (B, n_obj)) > 0.3
                    ).astype(jnp.float32)
    object_masks = object_masks.at[:, 0].set(1.0)   # avoid all-masked rows
    hidden_state = jax.random.normal(k_hid, (B, hidden_size), jnp.float32)

    loc_feat = attention_forward(frame_feats, object_feats, object_masks,
                                 hidden_state, prepared)
    loc_feat = jax.block_until_ready(loc_feat)

    ref = attention_ref(frame_feats, object_feats, object_masks, hidden_state,
                        region_params, frame_params)

    assert loc_feat.shape == (B, feat_projected_size * 3), loc_feat.shape
    # bf16 MXU operands + approx reciprocal -> compare with a loosened tolerance
    assert jnp.allclose(loc_feat, ref, atol=2e-2, rtol=2e-2), \
        float(jnp.max(jnp.abs(loc_feat - ref)))
    print("KERNEL_OK")
</pallas_src>

<mosaic_0001>
module attributes {stable_mosaic.version = 11 : i64} {
  func.func @_fused_attention_kernel(%arg0: memref<2x8x32xf32, #tpu.memory_space<vmem>>, %arg1: memref<2x8x64xf32, #tpu.memory_space<vmem>>, %arg2: memref<2x8xf32, #tpu.memory_space<vmem>>, %arg3: memref<2x32xf32, #tpu.memory_space<vmem>>, %arg4: memref<32x32xbf16, #tpu.memory_space<vmem>>, %arg5: memref<64x32xbf16, #tpu.memory_space<vmem>>, %arg6: memref<32x64xbf16, #tpu.memory_space<vmem>>, %arg7: memref<1x64xf32, #tpu.memory_space<vmem>>, %arg8: memref<1x32xf32, #tpu.memory_space<vmem>>, %arg9: memref<1x32xf32, #tpu.memory_space<vmem>>, %arg10: memref<2x128xf32, #tpu.memory_space<vmem>>) attributes {dimension_semantics = [], scalar_prefetch = 0 : i64, scratch_operands = 0 : i64, tpu.core_type = #tpu.core_type<tc>} {
    %c0 = arith.constant 0 : index
    %c0_0 = arith.constant 0 : index
    %0 = vector.load %arg3[%c0, %c0_0] : memref<2x32xf32, #tpu.memory_space<vmem>>, vector<2x32xf32>
    %1 = arith.truncf %0 : vector<2x32xf32> to vector<2x32xbf16>
    %c0_1 = arith.constant 0 : index
    %c0_2 = arith.constant 0 : index
    %2 = vector.load %arg6[%c0_1, %c0_2] : memref<32x64xbf16, #tpu.memory_space<vmem>>, vector<32x64xbf16>
    %cst = arith.constant dense<0.000000e+00> : vector<2x64xf32>
    %3 = tpu.matmul %1, %2, %cst {dimension_numbers = #tpu.dot_dimension_numbers<[1], [0], [0], [1], [0, 0, 1, 1], [], []>} : vector<2x32xbf16>, vector<32x64xbf16>, vector<2x64xf32> -> vector<2x64xf32>
    %c0_3 = arith.constant 0 : index
    %c0_4 = arith.constant 0 : index
    %4 = vector.load %arg7[%c0_3, %c0_4] : memref<1x64xf32, #tpu.memory_space<vmem>>, vector<1x64xf32>
    %5 = vector.broadcast %4 : vector<1x64xf32> to vector<2x64xf32>
    %6 = arith.addf %3, %5 : vector<2x64xf32>
    %7 = vector.extract_strided_slice %6 {offsets = [0, 0], sizes = [2, 32], strides = [1, 1]} : vector<2x64xf32> to vector<2x32xf32>
    %8 = vector.extract_strided_slice %6 {offsets = [0, 32], sizes = [2, 32], strides = [1, 1]} : vector<2x64xf32> to vector<2x32xf32>
    %c0_5 = arith.constant 0 : index
    %c0_6 = arith.constant 0 : index
    %c0_7 = arith.constant 0 : index
    %9 = vector.load %arg0[%c0_5, %c0_6, %c0_7] : memref<2x8x32xf32, #tpu.memory_space<vmem>>, vector<2x8x32xf32>
    %c0_8 = arith.constant 0 : index
    %c0_9 = arith.constant 0 : index
    %10 = vector.load %arg2[%c0_8, %c0_9] : memref<2x8xf32, #tpu.memory_space<vmem>>, vector<2x8xf32>
    %11 = vector.shape_cast %9 : vector<2x8x32xf32> to vector<16x32xf32>
    %12 = arith.truncf %11 : vector<16x32xf32> to vector<16x32xbf16>
    %c0_10 = arith.constant 0 : index
    %c0_11 = arith.constant 0 : index
    %13 = vector.load %arg4[%c0_10, %c0_11] : memref<32x32xbf16, #tpu.memory_space<vmem>>, vector<32x32xbf16>
    %cst_12 = arith.constant dense<0.000000e+00> : vector<16x32xf32>
    %14 = tpu.matmul %12, %13, %cst_12 {dimension_numbers = #tpu.dot_dimension_numbers<[1], [0], [0], [1], [0, 0, 1, 1], [], []>} : vector<16x32xbf16>, vector<32x32xbf16>, vector<16x32xf32> -> vector<16x32xf32>
    %15 = vector.shape_cast %14 : vector<16x32xf32> to vector<2x8x32xf32>
    %16 = vector.shape_cast %7 : vector<2x32xf32> to vector<2x1x32xf32>
    %17 = vector.broadcast %16 : vector<2x1x32xf32> to vector<2x8x32xf32>
    %18 = arith.addf %15, %17 : vector<2x8x32xf32>
    %19 = math.tanh %18 : vector<2x8x32xf32>
    %c0_13 = arith.constant 0 : index
    %c0_14 = arith.constant 0 : index
    %20 = vector.load %arg8[%c0_13, %c0_14] : memref<1x32xf32, #tpu.memory_space<vmem>>, vector<1x32xf32>
    %21 = vector.shape_cast %20 : vector<1x32xf32> to vector<1x1x32xf32>
    %22 = vector.broadcast %21 : vector<1x1x32xf32> to vector<2x8x32xf32>
    %23 = arith.mulf %19, %22 : vector<2x8x32xf32>
    %cst_15 = arith.constant dense<0.000000e+00> : vector<2x8xf32>
    %24 = vector.multi_reduction <add>, %23, %cst_15 [2] : vector<2x8x32xf32> to vector<2x8xf32>
    %cst_16 = arith.constant 5.000000e-01 : f32
    %25 = vector.broadcast %cst_16 : f32 to vector<2x8xf32>
    %26 = arith.cmpf olt, %10, %25 : vector<2x8xf32>
    %cst_17 = arith.constant -1.000000e+09 : f32
    %27 = vector.broadcast %cst_17 : f32 to vector<2x8xf32>
    %28 = arith.select %26, %27, %24 : vector<2x8xi1>, vector<2x8xf32>
    %cst_18 = arith.constant dense<0xFF800000> : vector<2xf32>
    %29 = vector.multi_reduction <maximumf>, %28, %cst_18 [1] : vector<2x8xf32> to vector<2xf32>
    %30 = vector.shape_cast %29 : vector<2xf32> to vector<2x1xf32>
    %31 = vector.broadcast %30 : vector<2x1xf32> to vector<2x8xf32>
    %32 = arith.subf %28, %31 : vector<2x8xf32>
    %33 = math.exp %32 : vector<2x8xf32>
    %cst_19 = arith.constant dense<0.000000e+00> : vector<2xf32>
    %34 = vector.multi_reduction <add>, %33, %cst_19 [1] : vector<2x8xf32> to vector<2xf32>
    %35 = vector.shape_cast %34 : vector<2xf32> to vector<2x1xf32>
    %36 = tpu.reciprocal %35 {approx = true} : vector<2x1xf32> -> vector<2x1xf32>
    %37 = vector.broadcast %36 : vector<2x1xf32> to vector<2x8xf32>
    %38 = arith.mulf %33, %37 : vector<2x8xf32>
    %39 = vector.shape_cast %38 : vector<2x8xf32> to vector<2x8x1xf32>
    %40 = vector.broadcast %39 : vector<2x8x1xf32> to vector<2x8x32xf32>
    %41 = arith.mulf %40, %9 : vector<2x8x32xf32>
    %cst_20 = arith.constant dense<0.000000e+00> : vector<2x32xf32>
    %42 = vector.multi_reduction <add>, %41, %cst_20 [1] : vector<2x8x32xf32> to vector<2x32xf32>
    %c0_21 = arith.constant 0 : index
    %c0_22 = arith.constant 0 : index
    %c0_23 = arith.constant 0 : index
    %43 = vector.load %arg1[%c0_21, %c0_22, %c0_23] : memref<2x8x64xf32, #tpu.memory_space<vmem>>, vector<2x8x64xf32>
    %44 = vector.shape_cast %43 : vector<2x8x64xf32> to vector<16x64xf32>
    %45 = arith.truncf %44 : vector<16x64xf32> to vector<16x64xbf16>
    %c0_24 = arith.constant 0 : index
    %c0_25 = arith.constant 0 : index
    %46 = vector.load %arg5[%c0_24, %c0_25] : memref<64x32xbf16, #tpu.memory_space<vmem>>, vector<64x32xbf16>
    %cst_26 = arith.constant dense<0.000000e+00> : vector<16x32xf32>
    %47 = tpu.matmul %45, %46, %cst_26 {dimension_numbers = #tpu.dot_dimension_numbers<[1], [0], [0], [1], [0, 0, 1, 1], [], []>} : vector<16x64xbf16>, vector<64x32xbf16>, vector<16x32xf32> -> vector<16x32xf32>
    %48 = vector.shape_cast %47 : vector<16x32xf32> to vector<2x8x32xf32>
    %49 = vector.shape_cast %8 : vector<2x32xf32> to vector<2x1x32xf32>
    %50 = vector.broadcast %49 : vector<2x1x32xf32> to vector<2x8x32xf32>
    %51 = arith.addf %48, %50 : vector<2x8x32xf32>
    %52 = math.tanh %51 : vector<2x8x32xf32>
    %c0_27 = arith.constant 0 : index
    %c0_28 = arith.constant 0 : index
    %53 = vector.load %arg9[%c0_27, %c0_28] : memref<1x32xf32, #tpu.memory_space<vmem>>, vector<1x32xf32>
    %54 = vector.shape_cast %53 : vector<1x32xf32> to vector<1x1x32xf32>
    %55 = vector.broadcast %54 : vector<1x1x32xf32> to vector<2x8x32xf32>
    %56 = arith.mulf %52, %55 : vector<2x8x32xf32>
    %cst_29 = arith.constant dense<0.000000e+00> : vector<2x8xf32>
    %57 = vector.multi_reduction <add>, %56, %cst_29 [2] : vector<2x8x32xf32> to vector<2x8xf32>
    %cst_30 = arith.constant dense<0xFF800000> : vector<2xf32>
    %58 = vector.multi_reduction <maximumf>, %57, %cst_30 [1] : vector<2x8xf32> to vector<2xf32>
    %59 = vector.shape_cast %58 : vector<2xf32> to vector<2x1xf32>
    %60 = vector.broadcast %59 : vector<2x1xf32> to vector<2x8xf32>
    %61 = arith.subf %57, %60 : vector<2x8xf32>
    %62 = math.exp %61 : vector<2x8xf32>
    %cst_31 = arith.constant dense<0.000000e+00> : vector<2xf32>
    %63 = vector.multi_reduction <add>, %62, %cst_31 [1] : vector<2x8xf32> to vector<2xf32>
    %64 = vector.shape_cast %63 : vector<2xf32> to vector<2x1xf32>
    %65 = tpu.reciprocal %64 {approx = true} : vector<2x1xf32> -> vector<2x1xf32>
    %66 = vector.broadcast %65 : vector<2x1xf32> to vector<2x8xf32>
    %67 = arith.mulf %62, %66 : vector<2x8xf32>
    %68 = vector.shape_cast %67 : vector<2x8xf32> to vector<2x8x1xf32>
    %69 = vector.broadcast %68 : vector<2x8x1xf32> to vector<2x8x64xf32>
    %70 = arith.mulf %69, %43 : vector<2x8x64xf32>
    %cst_32 = arith.constant dense<0.000000e+00> : vector<2x64xf32>
    %71 = vector.multi_reduction <add>, %70, %cst_32 [1] : vector<2x8x64xf32> to vector<2x64xf32>
    %cst_33 = arith.constant 0.000000e+00 : f32
    %72 = vector.broadcast %cst_33 : f32 to vector<2x32xf32>
    %73 = tpu.concatenate %42, %71, %72 in 1 : vector<2x32xf32>, vector<2x64xf32>, vector<2x32xf32> -> vector<2x128xf32>
    %c0_34 = arith.constant 0 : index
    %c0_35 = arith.constant 0 : index
    %74 = vector.load %arg10[%c0_34, %c0_35] : memref<2x128xf32, #tpu.memory_space<vmem>>, vector<2x128xf32>
    tpu.vector_store %arg10[%c0_34, %c0_35], %73 {strides = array<i32>} : memref<2x128xf32, #tpu.memory_space<vmem>>, vector<2x128xf32>,
    return
  }
}

</mosaic_0001>

<bundles_post_ra>
// kernel: attention_forward.1
= control target key start
LH: loop header
LB: loop body
LE: loop exit
PB: predicated region body
PF: predicated region fallthrough
CT: control target
= control target key end

     0   :  { %15 = vsyncpa [#allocation3], 0  ;;  %s826_s0 = inlined_call_operand.vmem [shape: f32[2,8,32], index: 0, kind: input, shape index: {}]   ;;  %s827_s1 = inlined_call_operand.vmem [shape: f32[2,8,64], index: 1, kind: input, shape index: {}]   ;;  %s828_s2 = inlined_call_operand.vmem [shape: f32[2,8], index: 2, kind: input, shape index: {}]   ;;  %s829_s3 = inlined_call_operand.vmem [shape: f32[2,32], index: 3, kind: input, shape index: {}]   ;;  %s830_s4 = inlined_call_operand.vmem [shape: bf16[32,32], index: 4, kind: input, shape index: {}]   ;;  %s831_s5 = inlined_call_operand.vmem [shape: bf16[64,32], index: 5, kind: input, shape index: {}]   ;;  %s832_s6 = inlined_call_operand.hbm [shape: bf16[32,64], index: 6, kind: input, shape index: {}]   ;;  %s833_s7 = inlined_call_operand.vmem [shape: f32[1,64], index: 7, kind: input, shape index: {}]   ;;  %s834_s8 = inlined_call_operand.vmem [shape: f32[1,32], index: 8, kind: input, shape index: {}]   ;;  %s835_s9 = inlined_call_operand.vmem [shape: f32[1,32], index: 9, kind: input, shape index: {}]   ;;  %s836_s10 = inlined_call_operand.hbm [shape: f32[2,128], index: 10, kind: output, shape index: {}]  }
   0x1   :  { %16 = vsyncpa [#allocation4], 0  ;;  %s657_s13 = smov [#allocation2]  }
   0x2   :  { %s34_s14 = sshll.u32 %s657_s13, 4  ;;  %s35_s14 = int_to_ptr.vmem [resolvable:$true] %s34_s14 }
   0x3   :  { %s621_s15 = scalar_lea.vmem %s35_s14, 256  ;;  %p626_p1 = scmp.lt.s32.totalorder %s35_s14, %s35_s14 }
   0x4   :  { %p622_p0 = scmp.ne.s32.totalorder %s35_s14, %s621_s15  ;;  %p627_p2 = scmp.lt.s32.totalorder %s621_s15, %s621_s15 }
   0x6   :  { %p628_p3 = por %p627_p2, %p626_p1 }
   0x8   :  { %p629_p4 = pnand %p628_p3, %p622_p0 }
   0xa   :  { %632 = shalt.err (!%p629_p4)
}
   0xb   :  { %s658_s16 = smov 64   ;;  %s659_s17 = smov 4  }
   0xc   :  { %40 = dma.hbm_to_vmem [thread:$0]  %s832_s6, 256, %s35_s14, [#allocation3], %s658_s16, %s658_s16, %s659_s17  }
   0xd   :  { %653 = dma.done.wait [#allocation3], 256  }
   0xe   :  { %654 = vsyncadd [#allocation3], 4294967040  ;;  %v660_v0 = vmov 0.0   ;;  %vm661_vm0 = vmmov 0   ;;  %v587_v1 = vld [vmem:[#allocation2 + $0x8] sm:$0xff]   ;;  %v588_v2 = vld [vmem:[#allocation2] sm:$0xff]   ;;  %v188_v19 = vlaneseq }
   0xf   :  { %547 = vmatprep.subr.bf16.mxu1 %v660_v0  ;;  %551 = vmatprep.mubr.msk.bf16.mxu1 %vm661_vm0, %v660_v0  ;;  %v51_v3 = vld [vmem:[%s829_s3] sm:$0x3]  ;;  %v591_v5 = vld [vmem:[%s831_s5 + $0x18] sm:$0xff]   ;;  %vm76_vm1 = vcmask 261120   ;;  %v589_v6 = vld [vmem:[%s830_s4 + $0x8] sm:$0xff]   ;;  %vm330_vm2 = vcmask 523264  }
  0x10   :  { %563 = vmatprep.subr.bf16.mxu0 %v660_v0  ;;  %571 = vmatprep.mubr.msk.bf16.mxu0 %vm661_vm0, %v660_v0  ;;  %v52_v4 = vpack.c.bf16 %v51_v3, %v51_v3  ;;  %v592_v7 = vld [vmem:[%s831_s5 + $0x10] sm:$0xff]   ;;  %v590_v8 = vld [vmem:[%s830_s4] sm:$0xff]   ;;  %v752_v10 = vld [vmem:[%s826_s0 + $0x8] sm:$0xff]  ;;  %v662_v17 = vmov 1966171168   ;;  %v776_v21 = vshrl.u32 %v188_v19, 7 }
  0x11   :  { %548 = vmatpush3.bf16.msra.mxu1 %v587_v1  ;;  %564 = vmatpush3.bf16.msra.mxu0 %v591_v5  ;;  %v747_v9 = vld [vmem:[%s826_s0] sm:$0xff]  ;;  %v593_v11 = vld [vmem:[%s831_s5 + $0x8] sm:$0xff]   ;;  %v186_v18 = vunpack.c.l.s4 %v662_v17  ;;  %vm249_vm3 = vcmask 1041409   ;;  %vm253_vm4 = vcmask 58368   ;;  %s666_s6 = smov [#allocation5]   ;;  %vm504_vm6 = vcmask 785408  }
  0x12   :  { %549 = vmatprep.subr.bf16.mxu1 %v660_v0  ;;  %565 = vmatprep.subr.bf16.mxu0 %v660_v0  ;;  %v123_v12 = vpack.c.bf16 %v752_v10, %v747_v9  ;;  %v594_v13 = vld [vmem:[%s831_s5] sm:$0xff]   ;;  %v770_v15 = vld [vmem:[%s827_s1 + $0x8] sm:$0xff]  ;;  %v783_v28 = vsub.s32 0, %v776_v21  ;;  %s513_s22 = sshll.u32 %s666_s6, 4  ;;  %s514_s22 = int_to_ptr.vmem [resolvable:$true] %s513_s22 }
  0x13   :  { %v765_v14 = vld [vmem:[%s827_s1] sm:$0xff]  ;;  %v187_v20 = vunpack.c.0.s8 %v186_v18  ;;  %s663_s1 = smov 96   ;;  %s633_s23 = scalar_lea.vmem %s514_s22, 32 }
  0x14   :  { %v297_v16 = vpack.c.bf16 %v770_v15, %v765_v14  ;;  %v522_v22 = vld [vmem:[%s833_s7] ss:$0 sm:$0xff]  ;;  %p634_p5 = scmp.ne.s32.totalorder %s514_s22, %s633_s23  ;;  %p638_p6 = scmp.lt.s32.totalorder %s514_s22, %s514_s22 }
  0x15   :  { %550 = vmatpush3.bf16.msra.mxu1 %v588_v2  ;;  %566 = vmatpush3.bf16.msra.mxu0 %v592_v7  ;;  %v190_v23 = vsub.s32 %v187_v20, %v776_v21  ;;  %v535_v50 = vld [vmem:[%s835_s9] ss:$0 sm:$0xff]  ;;  %p639_p7 = scmp.lt.s32.totalorder %s633_s23, %s633_s23 }
  0x16   :  { %555 = vmatprep.subr.bf16.mxu1 %v660_v0  ;;  %567 = vmatprep.subr.bf16.mxu0 %v660_v0  ;;  %v529_v56 = vld [vmem:[%s834_s8] ss:$0 sm:$0xff] }
  0x17   :  { %p640_p8 = por %p639_p7, %p638_p6 }
  0x18   :  { %552 = vmatmul.mubr.msk.bf16.vlgmr.msra.gmra.mxu1 %vm76_vm1, %v52_v4 }
  0x19   :  { %556 = vmatpush3.bf16.msra.mxu1 %v589_v6  ;;  %559 = vmatprep.mubr.msk.bf16.mxu1 %vm661_vm0, %v660_v0  ;;  %p641_p9 = pnand %p640_p8, %p634_p5 }
  0x1a   :  { %557 = vmatprep.subr.bf16.mxu1 %v660_v0  ;;  %568 = vmatpush3.bf16.msra.mxu0 %v593_v11  ;;  %v274_v11 = vsub.s32 1, %v776_v21 }
  0x1b   :  { %569 = vmatprep.subr.bf16.mxu0 %v660_v0  ;;  %v240_v0 = vand.u32 127, %v188_v19 }
  0x1d   :  { %558 = vmatpush3.bf16.msra.mxu1 %v590_v8  ;;  %v243_v2 = vsub.s32 %v240_v0, %v776_v21  ;;  %v664_v8 = vmov 0   ;;  %v122_v21 = vld [vmem:[%s828_s2] sm:$0x3]  ;;  %s665_s2 = smov 32  }
  0x1e   :  { %570 = vmatpush3.bf16.msra.mxu0 %v594_v13  ;;  %585 = vset.pattern.permute.xlu1 %v664_v8  ;;  %vm236_vm5 = vcmp.lt.f32.partialorder %v122_v21, 0.5 }
  0x1f   :  { %586 = vset.pattern.permute.xlu0 %v664_v8 }
  0x20   :  { %560 = vmatmul.mubr.msk.bf16.vlgmr.msra.gmra.mxu1 %vm76_vm1, %v123_v12 }
  0x21   :  { %572 = vmatmul.mubr.msk.bf16.vlgmr.msra.gmra.mxu0 %vm330_vm2, %v297_v16 }
  0xd8   :  { %v114_v24 = vpop.f32.mrf.mxu1 }
  0xd9   :  { %v115_v25 = vadd.f32 %v522_v22, %v114_v24 }
  0xda   :  { %v553_v26 = vpop.f32.mrf.mxu1 }
  0xdb   :  { %v191_v27 = vrot.slane %v115_v25, %v190_v23 }
  0xdc   :  { %v117_v29 = vpop.f32.mrf.mxu1 }
  0xdd   :  { %v192_v30 = vcombine.high %v191_v27, %v191_v27  ;;  %v199_v31 = vrot.slane %v191_v27, %v190_v23 }
  0xde   :  { %v554_v32 = vpop.f32.mrf.mxu1 }
  0xdf   :  { %v210_v33 = vrot.slane %v199_v31, %v783_v28  ;;  %v206_v34 = vrot.slane %v192_v30, %v190_v23 }
  0xe0   :  { %v177_v35 = vpop.f32.mrf.mxu1 }
  0xe1   :  { %v217_v36 = vadd.f32 %v210_v33, %v177_v35  ;;  %375 = vrot.lane.b32.xlu0 %v210_v33, %s663_s1  ;;  %v214_v38 = vrot.slane %v206_v34, %v783_v28  ;;  %v368_v41 = vpop.f32.mrf.mxu0 }
  0xe2   :  { %v561_v37 = vpop.f32.mrf.mxu1 }
  0xe3   :  { %v573_v43 = vpop.f32.mrf.mxu0 }
  0xe4   :  { %v180_v39 = vpop.f32.mrf.mxu1 }
  0xe5   :  { %v218_v40 = vadd.f32 %v214_v38, %v180_v39  ;;  %377 = vrot.lane.b32.xlu0 %v214_v38, %s663_s1  ;;  %v371_v44 = vpop.f32.mrf.mxu0 }
  0xe6   :  { %v562_v42 = vpop.f32.mrf.mxu1 }
  0xe7   :  { %v574_v45 = vpop.f32.mrf.mxu0 }
 0x153   :  { %v376_v46 = vpop.permute.xlu0 %375 }
 0x154   :  { %v381_v47 = vadd.f32 %v376_v46, %v368_v41 }
 0x156   :  { %595 = vtanh.f32 %v381_v47 }
 0x157   :  { %v378_v48 = vpop.permute.xlu0 %377  ;;  %597 = vtanh.f32 %v217_v36 }
 0x158   :  { %v382_v49 = vadd.f32 %v378_v48, %v371_v44 }
 0x15a   :  { %599 = vtanh.f32 %v382_v49 }
 0x15b   :  { %601 = vtanh.f32 %v218_v40 }
 0x163   :  { %v596_v51 = vpop.eup %595 }
 0x164   :  { %v392_v52 = vmul.f32 %v596_v51, %v535_v50  ;;  %v598_v53 = vpop.eup %597 }
 0x165   :  { %v228_v59 = vmul.f32 %v598_v53, %v529_v56 }
 0x166   :  { %v394_v54 = vsel %vm76_vm1, %v392_v52, 0.0 }
 0x167   :  { %v600_v55 = vpop.eup %599  ;;  %395 = vadd.xlane.f32.xlu1 %v394_v54  ;;  %v230_v61 = vsel %vm76_vm1, %v228_v59, 0.0 }
 0x168   :  { %v393_v57 = vmul.f32 %v600_v55, %v535_v50  ;;  %v602_v60 = vpop.eup %601 }
 0x169   :  { %v229_v62 = vmul.f32 %v602_v60, %v529_v56 }
 0x16a   :  { %v397_v58 = vsel %vm76_vm1, %v393_v57, 0.0 }
 0x16b   :  { %398 = vadd.xlane.f32.xlu1 %v397_v58  ;;  %v233_v63 = vsel %vm76_vm1, %v229_v62, 0.0 }
 0x16f   :  { %231 = vadd.xlane.f32.xlu1 %v230_v61 }
 0x173   :  { %234 = vadd.xlane.f32.xlu1 %v233_v63 }
 0x1f0   :  { %v396_v1 = vpop.xlane.xlu1 %395 }
 0x1f1   :  { %v405_v4 = vrot.slane %v396_v1, %v243_v2 }
 0x1f4   :  { %v399_v3 = vpop.xlane.xlu1 %398 }
 0x1f5   :  { %v409_v5 = vrot.slane %v399_v3, %v243_v2 }
 0x1f7   :  { %v410_v6 = vsel %vm249_vm3, %v409_v5, %v405_v4 }
 0x1f8   :  { %v412_v7 = vsel %vm253_vm4, %v410_v6, -inf  ;;  %v232_v24 = vpop.xlane.xlu1 %231 }
 0x1f9   :  { %413 = vmax.xlane.f32.xlu0 %v412_v7  ;;  %v244_v27 = vrot.slane %v232_v24, %v243_v2 }
 0x1fc   :  { %v235_v25 = vpop.xlane.xlu1 %234 }
 0x1fd   :  { %v248_v26 = vrot.slane %v235_v25, %v243_v2 }
 0x1ff   :  { %v250_v29 = vsel %vm249_vm3, %v248_v26, %v244_v27 }
 0x200   :  { %v252_v30 = vsel %vm236_vm5, -1e+09, %v250_v29 }
 0x201   :  { %v254_v31 = vsel %vm253_vm4, %v252_v30, -inf }
 0x282   :  { %v414_v12 = vpop.xlane.xlu0 %413 }
 0x283   :  { %v419_v13 = vrot.slane %v414_v12, %v783_v28  ;;  %v423_v16 = vrot.slane %v414_v12, %v274_v11 }
 0x285   :  { %v426_v17 = vsub.f32 %v396_v1, %v419_v13  ;;  %v427_v18 = vsub.f32 %v399_v3, %v423_v16 }
 0x287   :  { %v428_v19 = vmul.f32 1.442695, %v426_v17  ;;  %v430_v20 = vmul.f32 1.442695, %v427_v18 }
 0x289   :  { %603 = vpow2.f32 %v428_v19 }
 0x28a   :  { %605 = vpow2.f32 %v430_v20 }
 0x296   :  { %v604_v22 = vpop.eup %603 }
 0x297   :  { %435 = vperm.xlu1 %585, %v604_v22   ;;  %v606_v23 = vpop.eup %605 }
 0x29b   :  { %438 = vperm.xlu1 %585, %v606_v23  }
 0x2bf   :  { %255 = vmax.xlane.f32.xlu1 %v254_v31 }
 0x312   :  { %v436_v32 = vpop.permute.xlu1 %435 }
 0x313   :  { %v443_v34 = vrot.slane %v436_v32, %v243_v2 }
 0x316   :  { %v439_v33 = vpop.permute.xlu1 %438 }
 0x317   :  { %v447_v35 = vrot.slane %v439_v33, %v243_v2 }
 0x319   :  { %v448_v36 = vsel %vm249_vm3, %v447_v35, %v443_v34 }
 0x31a   :  { %v450_v37 = vsel %vm253_vm4, %v448_v36, 0.0 }
 0x31b   :  { %451 = vadd.xlane.f32.xlu0 %v450_v37 }
 0x348   :  { %v256_v38 = vpop.xlane.xlu1 %255 }
 0x349   :  { %v257_v39 = vsub.f32 %v252_v30, %v256_v38 }
 0x34b   :  { %v258_v40 = vmul.f32 1.442695, %v257_v39 }
 0x34d   :  { %607 = vpow2.f32 %v258_v40 }
 0x35a   :  { %v608_v41 = vpop.eup %607 }
 0x35b   :  { %v260_v42 = vsel %vm253_vm4, %v608_v41, 0.0 }
 0x35c   :  { %261 = vadd.xlane.f32.xlu0 %v260_v42 }
 0x3a4   :  { %v452_v43 = vpop.xlane.xlu0 %451 }
 0x3a5   :  { %609 = vrcp.f32 %v452_v43 }
 0x3b2   :  { %v610_v44 = vpop.eup %609 }
 0x3b3   :  { %v462_v45 = vrot.slane %v610_v44, %v274_v11  ;;  %v458_v46 = vrot.slane %v610_v44, %v783_v28 }
 0x3b5   :  { %v466_v47 = vmul.f32 %v606_v23, %v462_v45  ;;  %v465_v48 = vmul.f32 %v604_v22, %v458_v46 }
 0x3b7   :  { %474 = vperm.xlu1 %585, %v466_v47   ;;  %469 = vperm.xlu0 %586, %v465_v48  }
 0x3e5   :  { %v262_v49 = vpop.xlane.xlu0 %261 }
 0x3e6   :  { %611 = vrcp.f32 %v262_v49 }
 0x3f3   :  { %v612_v50 = vpop.eup %611 }
 0x3f4   :  { %v264_v51 = vmul.f32 %v612_v50, %v608_v41 }
 0x3f6   :  { %v275_v52 = vrot.slane %v264_v51, %v274_v11  ;;  %v268_v53 = vrot.slane %v264_v51, %v783_v28 }
 0x3f8   :  { %277 = vbcast.lane.b32.xlu0 %v275_v52, 256  ;;  %270 = vbcast.lane.b32.xlu1 %v268_v53, 256 }
 0x432   :  { %v470_v54 = vpop.permute.xlu0 %469  ;;  %v475_v55 = vpop.permute.xlu1 %474 }
 0x433   :  { %v477_v56 = vmul.f32 %v470_v54, %v765_v14  ;;  %v478_v57 = vmul.f32 %v475_v55, %v770_v15 }
 0x435   :  { %v479_v58 = vsel %vm330_vm2, %v477_v56, 0.0  ;;  %v486_v59 = vsel %vm330_vm2, %v478_v57, 0.0 }
 0x436   :  { %v480_v60 = vrot.slane %v479_v58, 4  ;;  %v487_v61 = vrot.slane %v486_v59, 4 }
 0x438   :  { %v481_v62 = vadd.f32 %v480_v60, %v479_v58  ;;  %v488_v63 = vadd.f32 %v487_v61, %v486_v59 }
 0x43a   :  { %v482_v0 = vrot.slane %v481_v62, 2  ;;  %v489_v1 = vrot.slane %v488_v63, 2 }
 0x43c   :  { %v483_v2 = vadd.f32 %v482_v0, %v481_v62  ;;  %v490_v28 = vadd.f32 %v489_v1, %v488_v63 }
 0x43e   :  { %v484_v3 = vrot.slane %v483_v2, 1  ;;  %v491_v4 = vrot.slane %v490_v28, 1 }
 0x440   :  { %v485_v5 = vadd.f32 %v484_v3, %v483_v2  ;;  %v492_v6 = vadd.f32 %v491_v4, %v490_v28 }
 0x442   :  { %v499_v14 = vsel %vm249_vm3, %v492_v6, %v485_v5 }
 0x443   :  { %500 = vrot.lane.b32.xlu1 %v499_v14, %s665_s2 }
 0x46a   :  { %v278_v15 = vpop.permute.xlu0 %277  ;;  %v271_v7 = vpop.permute.xlu1 %270 }
 0x46b   :  { %v280_v8 = vmul.f32 %v278_v15, %v752_v10  ;;  %v279_v11 = vmul.f32 %v271_v7, %v747_v9 }
 0x46d   :  { %v288_v12 = vsel %vm76_vm1, %v280_v8, 0.0  ;;  %v281_v13 = vsel %vm76_vm1, %v279_v11, 0.0 }
 0x46e   :  { %v289_v16 = vrot.slane %v288_v12, 4  ;;  %v282_v17 = vrot.slane %v281_v13, 4 }
 0x470   :  { %v290_v18 = vadd.f32 %v289_v16, %v288_v12  ;;  %v283_v19 = vadd.f32 %v282_v17, %v281_v13 }
 0x472   :  { %v291_v20 = vrot.slane %v290_v18, 2  ;;  %v284_v22 = vrot.slane %v283_v19, 2 }
 0x474   :  { %v292_v23 = vadd.f32 %v291_v20, %v290_v18  ;;  %v285_v24 = vadd.f32 %v284_v22, %v283_v19 }
 0x476   :  { %v293_v25 = vrot.slane %v292_v23, 1  ;;  %v286_v26 = vrot.slane %v285_v24, 1 }
 0x478   :  { %v294_v21 = vadd.f32 %v293_v25, %v292_v23  ;;  %v287_v27 = vadd.f32 %v286_v26, %v285_v24 }
 0x47a   :  { %v495_v9 = vsel %vm249_vm3, %v294_v21, %v287_v27 }
 0x4b5   :  { %v501_v10 = vpop.permute.xlu1 %500 }
 0x4b6   :  { %v503_v29 = vsel %vm76_vm1, %v495_v9, %v501_v10 }
 0x4b7   :  { %v505_v30 = vsel %vm504_vm6, %v503_v29, 0.0 }
 0x4b8   :  { %506 = vst [vmem:[#allocation5] sm:$0x3] %v505_v30 }
 0x4b9   :  { %644 = shalt.err (!%p641_p9)
}
 0x4ba   :  { %516 = dma.vmem_to_hbm [thread:$0]  %s514_s22, 32, %s836_s10, [#allocation4]  }
 0x4bb   :  { %655 = dma.done.wait [#allocation4], 32  }
 0x4bc   :  { %656 = vsyncadd [#allocation4], 4294967264 }
 0x4bd   :  { %520 = vsyncpa [#allocation3], 1 }
 0x4be   :  { %521 = vsyncpa [#allocation4], 1 }

</bundles_post_ra>
